<compile_context>
chip_gen: v7x
topology: tpu7x:2x2x1
jax: 0.10.0
libtpu: 0.0.40
codegen_flags: <defaults>
</compile_context>

<pallas_src>
import jax
import jax.numpy as jnp
from jax.experimental import pallas as pl
from jax.experimental.pallas import tpu as pltpu

SEQ_LEN = 30
LATENT_DIM = 10
H1 = 64
H2 = 32

W = 64            # padded fan-in/fan-out of the weight slab (max real dim is 64)
N_W_BLOCKS = 5    # enc1, enc2, fused mu|logvar, dec1, dec2
MAX_TB = 2048     # batch-tile cap (per-tile working set ~2 MiB, far below VMEM limits)
MIN_SPLIT_B = 128 # below this, a single tile; splitting is pure per-step overhead


def _round_up(n, m):
    return ((n + m - 1) // m) * m


def _choose_tb(batch):
    """Balanced batch tile: multiple of 8, and >=2 tiles for large batches so the
    'parallel' grid axis can shard across both v7x TensorCores."""
    if batch <= MIN_SPLIT_B:
        return _round_up(max(batch, 1), 8)
    n_tiles = max(pl.cdiv(batch, MAX_TB), 2)
    return _round_up(pl.cdiv(batch, n_tiles), 8)


def _vae_kernel(x_ref, eps_ref, w_ref, b_ref, recon_ref, mu_ref, lv_ref):
    """One batch tile.

    x_ref    : (TB, 30) f32
    eps_ref  : (TB, 10) f32
    w_ref    : (5, 64, 64) bf16  zero-padded weight slab (VMEM-resident)
    b_ref    : (8, 64) f32       row i = bias of layer i, zero-padded lanes
    recon_ref: (TB, 30) f32
    mu_ref   : (TB, 10) f32
    lv_ref   : (TB, 10) f32

    Invariant (see pack_params): all padded weight rows/cols and bias lanes are
    exactly zero, so activation lanes >= the real fan_out stay exactly zero.
    """
    x = x_ref[...]
    eps = eps_ref[...]
    b = b_ref[...]
    tb = x.shape[0]

    def mm(a, blk):
        # bf16 operands on the MXU, f32 accumulation.
        return jnp.dot(a.astype(jnp.bfloat16), w_ref[blk],
                       preferred_element_type=jnp.float32)

    def pad_lanes(a, width):
        # Zero-extend the lane dim so every matmul is a uniform (TB,64)x(64,64);
        # the extra lanes hit zero weight rows, contributing exactly 0.
        return jnp.concatenate(
            [a, jnp.zeros((tb, width - a.shape[1]), jnp.float32)], axis=-1)

    # ---- encoder: Linear(30,64) -> ReLU -> Linear(64,32) -> ReLU ----
    h = jnp.maximum(mm(pad_lanes(x, W), 0) + b[0:1], 0.0)   # (TB,64): h1 in lanes 0:64
    h = jnp.maximum(mm(h, 1) + b[1:2], 0.0)                 # (TB,64): h2 in lanes 0:32

    # ---- fused latent heads: one matmul, mu in lanes 0:10, logvar in lanes 10:20 ----
    mulv = mm(h, 2) + b[2:3]
    mu = mulv[:, :LATENT_DIM]
    logvar = mulv[:, LATENT_DIM:2 * LATENT_DIM]

    # ---- reparameterization (f32 elementwise): z = mu + exp(0.5*logvar) * eps ----
    z = mu + jnp.exp(0.5 * logvar) * eps                    # (TB,10)

    # ---- decoder: Linear(10,32) -> ReLU -> Linear(32,30) -> Tanh ----
    d = jnp.maximum(mm(pad_lanes(z, W), 3) + b[3:4], 0.0)   # (TB,64): lanes 0:32
    recon = jnp.tanh(mm(d, 4) + b[4:5])                     # (TB,64): lanes 0:30

    recon_ref[...] = recon[:, :SEQ_LEN]
    mu_ref[...] = mu
    lv_ref[...] = logvar


def pack_params(params):
    """12 PyTorch-layout tensors -> (bf16 weight slab (5,64,64), f32 bias slab (8,64)).

    Call once per parameter update (NOT inside the per-call forward path).
    All padded entries must stay exactly zero (the kernel relies on it).
    """
    (w1, b1, w2, b2, wmu, bmu, wlv, blv, wd1, bd1, wd2, bd2) = params

    w = jnp.zeros((N_W_BLOCKS, W, W), jnp.float32)
    w = w.at[0, :SEQ_LEN, :H1].set(w1)
    w = w.at[1, :H1, :H2].set(w2)
    w = w.at[2, :H2, :LATENT_DIM].set(wmu)                      # fused mu|logvar head
    w = w.at[2, :H2, LATENT_DIM:2 * LATENT_DIM].set(wlv)
    w = w.at[3, :LATENT_DIM, :H2].set(wd1)
    w = w.at[4, :H2, :SEQ_LEN].set(wd2)

    b = jnp.zeros((8, W), jnp.float32)
    b = b.at[0, :H1].set(b1.reshape(-1))
    b = b.at[1, :H2].set(b2.reshape(-1))
    b = b.at[2, :LATENT_DIM].set(bmu.reshape(-1))
    b = b.at[2, LATENT_DIM:2 * LATENT_DIM].set(blv.reshape(-1))
    b = b.at[3, :H2].set(bd1.reshape(-1))
    b = b.at[4, :SEQ_LEN].set(bd2.reshape(-1))
    return w.astype(jnp.bfloat16), b


@jax.jit
def timeseries_vae_forward(x, eps, wslab, bslab):
    """x: (B, seq_len, 1) or (B, seq_len); eps: (B, latent_dim).
    wslab/bslab: output of pack_params. Returns (recon (B,seq_len,1), mu, logvar)."""
    B = x.shape[0]
    x2d = x.reshape(B, SEQ_LEN).astype(jnp.float32)          # == torch x.view(B, -1)
    eps = eps.astype(jnp.float32)

    tb = _choose_tb(B)
    grid = (pl.cdiv(B, tb),)

    recon, mu, logvar = pl.pallas_call(
        _vae_kernel,
        out_shape=(
            jax.ShapeDtypeStruct((B, SEQ_LEN), jnp.float32),
            jax.ShapeDtypeStruct((B, LATENT_DIM), jnp.float32),
            jax.ShapeDtypeStruct((B, LATENT_DIM), jnp.float32),
        ),
        grid_spec=pltpu.PrefetchScalarGridSpec(
            num_scalar_prefetch=0,
            grid=grid,
            in_specs=[
                pl.BlockSpec((tb, SEQ_LEN), lambda i: (i, 0)),          # x: pipelined
                pl.BlockSpec((tb, LATENT_DIM), lambda i: (i, 0)),       # eps: pipelined
                pl.BlockSpec((N_W_BLOCKS, W, W), lambda i: (0, 0, 0)),  # weights: resident
                pl.BlockSpec((8, W), lambda i: (0, 0)),                 # biases: resident
            ],
            out_specs=[
                pl.BlockSpec((tb, SEQ_LEN), lambda i: (i, 0)),
                pl.BlockSpec((tb, LATENT_DIM), lambda i: (i, 0)),
                pl.BlockSpec((tb, LATENT_DIM), lambda i: (i, 0)),
            ],
        ),
        compiler_params=pltpu.CompilerParams(
            dimension_semantics=("parallel",),   # v7x: shard batch tiles over both TCs
        ),
    )(x2d, eps, wslab, bslab)

    return recon[..., None], mu, logvar                       # recon.unsqueeze(-1)


def init_params(key):
    """Deterministic PyTorch-style init. Weights stored (in,out); biases (1,out)."""
    def linear(k, fan_in, fan_out):
        kw, kb = jax.random.split(k)
        bound = 1.0 / jnp.sqrt(fan_in)
        w = jax.random.uniform(kw, (fan_in, fan_out), jnp.float32, -bound, bound)
        b = jax.random.uniform(kb, (1, fan_out), jnp.float32, -bound, bound)
        return w, b

    keys = jax.random.split(key, 6)
    w1, b1 = linear(keys[0], SEQ_LEN, H1)        # encoder[0]
    w2, b2 = linear(keys[1], H1, H2)             # encoder[2]
    wmu, bmu = linear(keys[2], H2, LATENT_DIM)   # mu head
    wlv, blv = linear(keys[3], H2, LATENT_DIM)   # logvar head
    wd1, bd1 = linear(keys[4], LATENT_DIM, H2)   # decoder[0]
    wd2, bd2 = linear(keys[5], H2, SEQ_LEN)      # decoder[2]
    return (w1, b1, w2, b2, wmu, bmu, wlv, blv, wd1, bd1, wd2, bd2)


def vae_reference(x, eps, params):
    """Pure-JAX reference using the same bf16 matmul operands / f32 accumulation."""
    (w1, b1, w2, b2, wmu, bmu, wlv, blv, wd1, bd1, wd2, bd2) = params
    B = x.shape[0]
    xb = x.reshape(B, -1).astype(jnp.float32)

    def lin(a, w, b):
        return jnp.dot(a.astype(jnp.bfloat16), w.astype(jnp.bfloat16),
                       preferred_element_type=jnp.float32) + b

    h = jnp.maximum(lin(xb, w1, b1), 0.0)
    h = jnp.maximum(lin(h, w2, b2), 0.0)
    mu = lin(h, wmu, bmu)
    logvar = lin(h, wlv, blv)
    z = mu + jnp.exp(0.5 * logvar) * eps
    d = jnp.maximum(lin(z, wd1, bd1), 0.0)
    recon = jnp.tanh(lin(d, wd2, bd2))
    return recon[..., None], mu, logvar


if __name__ == "__main__":
    key = jax.random.PRNGKey(0)
    k_param, k_x, k_eps = jax.random.split(key, 3)

    B = 8
    params = init_params(k_param)
    wslab, bslab = pack_params(params)           # packed once, outside the forward path
    x = jax.random.normal(k_x, (B, SEQ_LEN, 1), jnp.float32)        # (batch, seq_len, 1)
    eps = jax.random.normal(k_eps, (B, LATENT_DIM), jnp.float32)    # torch.randn_like(std)

    recon, mu, logvar = timeseries_vae_forward(x, eps, wslab, bslab)
    jax.block_until_ready((recon, mu, logvar))

    assert recon.shape == (B, SEQ_LEN, 1)
    assert mu.shape == (B, LATENT_DIM)
    assert logvar.shape == (B, LATENT_DIM)
    assert bool(jnp.all(jnp.isfinite(recon)))
    assert bool(jnp.all(jnp.abs(recon) <= 1.0))      # tanh output range

    # Correctness vs. a pure-JAX reference with identical numerics.
    r_ref, mu_ref, lv_ref = vae_reference(x, eps, params)
    assert bool(jnp.allclose(recon, r_ref, atol=5e-3, rtol=5e-3)), \
        float(jnp.max(jnp.abs(recon - r_ref)))
    assert bool(jnp.allclose(mu, mu_ref, atol=5e-3, rtol=5e-3))
    assert bool(jnp.allclose(logvar, lv_ref, atol=5e-3, rtol=5e-3))

    print("KERNEL_OK")
</pallas_src>

<mosaic_0001>
module attributes {stable_mosaic.version = 11 : i64} {
  func.func @_vae_kernel(%arg0: i32, %arg1: memref<8x30xf32, #tpu.memory_space<vmem>>, %arg2: memref<8x10xf32, #tpu.memory_space<vmem>>, %arg3: memref<5x64x64xbf16, #tpu.memory_space<vmem>>, %arg4: memref<8x64xf32, #tpu.memory_space<vmem>>, %arg5: memref<8x30xf32, #tpu.memory_space<vmem>>, %arg6: memref<8x10xf32, #tpu.memory_space<vmem>>, %arg7: memref<8x10xf32, #tpu.memory_space<vmem>>) attributes {dimension_semantics = [#tpu.dimension_semantics<parallel>], iteration_bounds = array<i64: 1>, scalar_prefetch = 0 : i64, scratch_operands = 0 : i64, tpu.core_type = #tpu.core_type<tc>, window_params = [{transform_indices = @transform_0, window_bounds = array<i64: 8, 30>}, {transform_indices = @transform_1, window_bounds = array<i64: 8, 10>}, {pipeline_mode = #tpu.pipeline_mode<synchronous>, transform_indices = @transform_2, window_bounds = array<i64: 5, 64, 64>}, {pipeline_mode = #tpu.pipeline_mode<synchronous>, transform_indices = @transform_3, window_bounds = array<i64: 8, 64>}, {transform_indices = @transform_4, window_bounds = array<i64: 8, 30>}, {transform_indices = @transform_5, window_bounds = array<i64: 8, 10>}, {transform_indices = @transform_6, window_bounds = array<i64: 8, 10>}]} {
    %c0 = arith.constant 0 : index
    %c0_0 = arith.constant 0 : index
    %0 = vector.load %arg1[%c0, %c0_0] : memref<8x30xf32, #tpu.memory_space<vmem>>, vector<8x30xf32>
    %c0_1 = arith.constant 0 : index
    %c0_2 = arith.constant 0 : index
    %1 = vector.load %arg2[%c0_1, %c0_2] : memref<8x10xf32, #tpu.memory_space<vmem>>, vector<8x10xf32>
    %c0_3 = arith.constant 0 : index
    %c0_4 = arith.constant 0 : index
    %2 = vector.load %arg4[%c0_3, %c0_4] : memref<8x64xf32, #tpu.memory_space<vmem>>, vector<8x64xf32>
    %cst = arith.constant 0.000000e+00 : f32
    %3 = vector.broadcast %cst : f32 to vector<8x34xf32>
    %4 = tpu.concatenate %0, %3 in 1 : vector<8x30xf32>, vector<8x34xf32> -> vector<8x64xf32>
    %5 = arith.truncf %4 : vector<8x64xf32> to vector<8x64xbf16>
    %c0_5 = arith.constant 0 : index
    %c0_6 = arith.constant 0 : index
    %c0_7 = arith.constant 0 : index
    %6 = vector.load %arg3[%c0_5, %c0_6, %c0_7] : memref<5x64x64xbf16, #tpu.memory_space<vmem>>, vector<1x64x64xbf16>
    %7 = vector.shape_cast %6 : vector<1x64x64xbf16> to vector<64x64xbf16>
    %cst_8 = arith.constant dense<0.000000e+00> : vector<8x64xf32>
    %8 = tpu.matmul %5, %7, %cst_8 {dimension_numbers = #tpu.dot_dimension_numbers<[1], [0], [0], [1], [0, 0, 1, 1], [], []>} : vector<8x64xbf16>, vector<64x64xbf16>, vector<8x64xf32> -> vector<8x64xf32>
    %9 = vector.extract_strided_slice %2 {offsets = [0, 0], sizes = [1, 64], strides = [1, 1]} : vector<8x64xf32> to vector<1x64xf32>
    %10 = vector.broadcast %9 : vector<1x64xf32> to vector<8x64xf32>
    %11 = arith.addf %8, %10 : vector<8x64xf32>
    %cst_9 = arith.constant 0.000000e+00 : f32
    %12 = vector.broadcast %cst_9 : f32 to vector<8x64xf32>
    %13 = arith.maximumf %11, %12 : vector<8x64xf32>
    %14 = arith.truncf %13 : vector<8x64xf32> to vector<8x64xbf16>
    %c1 = arith.constant 1 : index
    %c0_10 = arith.constant 0 : index
    %c0_11 = arith.constant 0 : index
    %15 = vector.load %arg3[%c1, %c0_10, %c0_11] : memref<5x64x64xbf16, #tpu.memory_space<vmem>>, vector<1x64x64xbf16>
    %16 = vector.shape_cast %15 : vector<1x64x64xbf16> to vector<64x64xbf16>
    %cst_12 = arith.constant dense<0.000000e+00> : vector<8x64xf32>
    %17 = tpu.matmul %14, %16, %cst_12 {dimension_numbers = #tpu.dot_dimension_numbers<[1], [0], [0], [1], [0, 0, 1, 1], [], []>} : vector<8x64xbf16>, vector<64x64xbf16>, vector<8x64xf32> -> vector<8x64xf32>
    %18 = vector.extract_strided_slice %2 {offsets = [1, 0], sizes = [1, 64], strides = [1, 1]} : vector<8x64xf32> to vector<1x64xf32>
    %19 = vector.broadcast %18 : vector<1x64xf32> to vector<8x64xf32>
    %20 = arith.addf %17, %19 : vector<8x64xf32>
    %cst_13 = arith.constant 0.000000e+00 : f32
    %21 = vector.broadcast %cst_13 : f32 to vector<8x64xf32>
    %22 = arith.maximumf %20, %21 : vector<8x64xf32>
    %23 = arith.truncf %22 : vector<8x64xf32> to vector<8x64xbf16>
    %c2 = arith.constant 2 : index
    %c0_14 = arith.constant 0 : index
    %c0_15 = arith.constant 0 : index
    %24 = vector.load %arg3[%c2, %c0_14, %c0_15] : memref<5x64x64xbf16, #tpu.memory_space<vmem>>, vector<1x64x64xbf16>
    %25 = vector.shape_cast %24 : vector<1x64x64xbf16> to vector<64x64xbf16>
    %cst_16 = arith.constant dense<0.000000e+00> : vector<8x64xf32>
    %26 = tpu.matmul %23, %25, %cst_16 {dimension_numbers = #tpu.dot_dimension_numbers<[1], [0], [0], [1], [0, 0, 1, 1], [], []>} : vector<8x64xbf16>, vector<64x64xbf16>, vector<8x64xf32> -> vector<8x64xf32>
    %27 = vector.extract_strided_slice %2 {offsets = [2, 0], sizes = [1, 64], strides = [1, 1]} : vector<8x64xf32> to vector<1x64xf32>
    %28 = vector.broadcast %27 : vector<1x64xf32> to vector<8x64xf32>
    %29 = arith.addf %26, %28 : vector<8x64xf32>
    %30 = vector.extract_strided_slice %29 {offsets = [0, 0], sizes = [8, 10], strides = [1, 1]} : vector<8x64xf32> to vector<8x10xf32>
    %31 = vector.extract_strided_slice %29 {offsets = [0, 10], sizes = [8, 10], strides = [1, 1]} : vector<8x64xf32> to vector<8x10xf32>
    %cst_17 = arith.constant 5.000000e-01 : f32
    %32 = vector.broadcast %cst_17 : f32 to vector<8x10xf32>
    %33 = arith.mulf %32, %31 : vector<8x10xf32>
    %34 = math.exp %33 : vector<8x10xf32>
    %35 = arith.mulf %34, %1 : vector<8x10xf32>
    %36 = arith.addf %30, %35 : vector<8x10xf32>
    %cst_18 = arith.constant 0.000000e+00 : f32
    %37 = vector.broadcast %cst_18 : f32 to vector<8x54xf32>
    %38 = tpu.concatenate %36, %37 in 1 : vector<8x10xf32>, vector<8x54xf32> -> vector<8x64xf32>
    %39 = arith.truncf %38 : vector<8x64xf32> to vector<8x64xbf16>
    %c3 = arith.constant 3 : index
    %c0_19 = arith.constant 0 : index
    %c0_20 = arith.constant 0 : index
    %40 = vector.load %arg3[%c3, %c0_19, %c0_20] : memref<5x64x64xbf16, #tpu.memory_space<vmem>>, vector<1x64x64xbf16>
    %41 = vector.shape_cast %40 : vector<1x64x64xbf16> to vector<64x64xbf16>
    %cst_21 = arith.constant dense<0.000000e+00> : vector<8x64xf32>
    %42 = tpu.matmul %39, %41, %cst_21 {dimension_numbers = #tpu.dot_dimension_numbers<[1], [0], [0], [1], [0, 0, 1, 1], [], []>} : vector<8x64xbf16>, vector<64x64xbf16>, vector<8x64xf32> -> vector<8x64xf32>
    %43 = vector.extract_strided_slice %2 {offsets = [3, 0], sizes = [1, 64], strides = [1, 1]} : vector<8x64xf32> to vector<1x64xf32>
    %44 = vector.broadcast %43 : vector<1x64xf32> to vector<8x64xf32>
    %45 = arith.addf %42, %44 : vector<8x64xf32>
    %cst_22 = arith.constant 0.000000e+00 : f32
    %46 = vector.broadcast %cst_22 : f32 to vector<8x64xf32>
    %47 = arith.maximumf %45, %46 : vector<8x64xf32>
    %48 = arith.truncf %47 : vector<8x64xf32> to vector<8x64xbf16>
    %c4 = arith.constant 4 : index
    %c0_23 = arith.constant 0 : index
    %c0_24 = arith.constant 0 : index
    %49 = vector.load %arg3[%c4, %c0_23, %c0_24] : memref<5x64x64xbf16, #tpu.memory_space<vmem>>, vector<1x64x64xbf16>
    %50 = vector.shape_cast %49 : vector<1x64x64xbf16> to vector<64x64xbf16>
    %cst_25 = arith.constant dense<0.000000e+00> : vector<8x64xf32>
    %51 = tpu.matmul %48, %50, %cst_25 {dimension_numbers = #tpu.dot_dimension_numbers<[1], [0], [0], [1], [0, 0, 1, 1], [], []>} : vector<8x64xbf16>, vector<64x64xbf16>, vector<8x64xf32> -> vector<8x64xf32>
    %52 = vector.extract_strided_slice %2 {offsets = [4, 0], sizes = [1, 64], strides = [1, 1]} : vector<8x64xf32> to vector<1x64xf32>
    %53 = vector.broadcast %52 : vector<1x64xf32> to vector<8x64xf32>
    %54 = arith.addf %51, %53 : vector<8x64xf32>
    %55 = math.tanh %54 : vector<8x64xf32>
    %56 = vector.extract_strided_slice %55 {offsets = [0, 0], sizes = [8, 30], strides = [1, 1]} : vector<8x64xf32> to vector<8x30xf32>
    %c0_26 = arith.constant 0 : index
    %c0_27 = arith.constant 0 : index
    %57 = vector.load %arg5[%c0_26, %c0_27] : memref<8x30xf32, #tpu.memory_space<vmem>>, vector<8x30xf32>
    tpu.vector_store %arg5[%c0_26, %c0_27], %56 {strides = array<i32>} : memref<8x30xf32, #tpu.memory_space<vmem>>, vector<8x30xf32>,
    %c0_28 = arith.constant 0 : index
    %c0_29 = arith.constant 0 : index
    %58 = vector.load %arg6[%c0_28, %c0_29] : memref<8x10xf32, #tpu.memory_space<vmem>>, vector<8x10xf32>
    tpu.vector_store %arg6[%c0_28, %c0_29], %30 {strides = array<i32>} : memref<8x10xf32, #tpu.memory_space<vmem>>, vector<8x10xf32>,
    %c0_30 = arith.constant 0 : index
    %c0_31 = arith.constant 0 : index
    %59 = vector.load %arg7[%c0_30, %c0_31] : memref<8x10xf32, #tpu.memory_space<vmem>>, vector<8x10xf32>
    tpu.vector_store %arg7[%c0_30, %c0_31], %31 {strides = array<i32>} : memref<8x10xf32, #tpu.memory_space<vmem>>, vector<8x10xf32>,
    return
  }
  func.func @transform_0(%arg0: i32) -> (i32, i32) {
    %c0_i32 = arith.constant 0 : i32
    %c0_i32_0 = arith.constant 0 : i32
    return %arg0, %c0_i32 : i32, i32
  }
  func.func @transform_1(%arg0: i32) -> (i32, i32) {
    %c0_i32 = arith.constant 0 : i32
    %c0_i32_0 = arith.constant 0 : i32
    return %arg0, %c0_i32 : i32, i32
  }
  func.func @transform_2(%arg0: i32) -> (i32, i32, i32) {
    %c0_i32 = arith.constant 0 : i32
    %c0_i32_0 = arith.constant 0 : i32
    %c0_i32_1 = arith.constant 0 : i32
    %c0_i32_2 = arith.constant 0 : i32
    return %c0_i32, %c0_i32_0, %c0_i32_1 : i32, i32, i32
  }
  func.func @transform_3(%arg0: i32) -> (i32, i32) {
    %c0_i32 = arith.constant 0 : i32
    %c0_i32_0 = arith.constant 0 : i32
    %c0_i32_1 = arith.constant 0 : i32
    return %c0_i32, %c0_i32_0 : i32, i32
  }
  func.func @transform_4(%arg0: i32) -> (i32, i32) {
    %c0_i32 = arith.constant 0 : i32
    %c0_i32_0 = arith.constant 0 : i32
    return %arg0, %c0_i32 : i32, i32
  }
  func.func @transform_5(%arg0: i32) -> (i32, i32) {
    %c0_i32 = arith.constant 0 : i32
    %c0_i32_0 = arith.constant 0 : i32
    return %arg0, %c0_i32 : i32, i32
  }
  func.func @transform_6(%arg0: i32) -> (i32, i32) {
    %c0_i32 = arith.constant 0 : i32
    %c0_i32_0 = arith.constant 0 : i32
    return %arg0, %c0_i32 : i32, i32
  }
}

</mosaic_0001>

<bundles_post_ra>
// kernel: timeseries_vae_forward.1
= control target key start
LH: loop header
LB: loop body
LE: loop exit
PB: predicated region body
PF: predicated region fallthrough
CT: control target
= control target key end

     0   :  { %12 = vsyncpa [#allocation3], 0  ;;  %s1001_s0 = inlined_call_operand.hbm [shape: f32[8,30], index: 0, kind: input, shape index: {}]   ;;  %s1002_s1 = inlined_call_operand.hbm [shape: f32[8,10], index: 1, kind: input, shape index: {}]   ;;  %s1003_s2 = inlined_call_operand.hbm [shape: bf16[5,64,64], index: 2, kind: input, shape index: {}]   ;;  %s1004_s3 = inlined_call_operand.vmem [shape: f32[8,64], index: 3, kind: input, shape index: {}]   ;;  %s1005_s4 = inlined_call_operand.hbm [shape: f32[8,30], index: 4, kind: output, shape index: {0}]   ;;  %s1006_s5 = inlined_call_operand.hbm [shape: f32[8,10], index: 5, kind: output, shape index: {1}]   ;;  %s1007_s6 = inlined_call_operand.hbm [shape: f32[8,10], index: 6, kind: output, shape index: {2}]  }
   0x1   :  { %13 = vsyncpa [#allocation6], 0 }
   0x2   :  { %14 = vsyncpa [#allocation4], 0 }
   0x3   :  { %15 = vsyncpa [#allocation10], 0  ;;  %s825_s21 = smov [#allocation5]   ;;  %s826_s23 = smov [#allocation2]  }
   0x4   :  { %s32_s22 = sshll.u32 %s825_s21, 4  ;;  %s22_s24 = sshll.u32 %s826_s23, 4  ;;  %s33_s22 = int_to_ptr.vmem [resolvable:$true] %s32_s22  ;;  %s23_s24 = int_to_ptr.vmem [resolvable:$true] %s22_s24 }
   0x5   :  { %s685_s27 = scalar_lea.hbm %s1002_s1, 128 }
   0x6   :  { %p686_p0 = scmp.ne.s32.totalorder %s1002_s1, %s685_s27  ;;  %p689_p1 = scmp.lt.u32.totalorder %s685_s27, %s1002_s1 }
   0x8   :  { %p691_p2 = pnand %p689_p1, %p686_p0 }
   0xa   :  { %694 = shalt.err (!%p691_p2)
}
   0xb   :  { %s695_s8 = scalar_lea.vmem %s33_s22, 128  ;;  %p700_p4 = scmp.lt.s32.totalorder %s33_s22, %s33_s22 }
   0xc   :  { %p696_p3 = scmp.ne.s32.totalorder %s33_s22, %s695_s8  ;;  %p701_p5 = scmp.lt.s32.totalorder %s695_s8, %s695_s8 }
   0xe   :  { %p702_p6 = por %p701_p5, %p700_p4 }
  0x10   :  { %p703_p7 = pnand %p702_p6, %p696_p3 }
  0x12   :  { %706 = shalt.err (!%p703_p7)
}
  0x13   :  { %35 = dma.hbm_to_vmem [thread:$0]  %s1002_s1, 128, %s33_s22, [#allocation6]  }
  0x14   :  { %s707_s13 = scalar_lea.hbm %s1001_s0, 128 }
  0x15   :  { %p708_p8 = scmp.ne.s32.totalorder %s1001_s0, %s707_s13  ;;  %p711_p9 = scmp.lt.u32.totalorder %s707_s13, %s1001_s0 }
  0x17   :  { %p713_p10 = pnand %p711_p9, %p708_p8 }
  0x19   :  { %716 = shalt.err (!%p713_p10)
}
  0x1a   :  { %s717_s18 = scalar_lea.vmem %s23_s24, 128  ;;  %p722_p12 = scmp.lt.s32.totalorder %s23_s24, %s23_s24 }
  0x1b   :  { %p718_p11 = scmp.ne.s32.totalorder %s23_s24, %s717_s18  ;;  %p723_p13 = scmp.lt.s32.totalorder %s717_s18, %s717_s18 }
  0x1d   :  { %p724_p0 = por %p723_p13, %p722_p12 }
  0x1f   :  { %p725_p1 = pnand %p724_p0, %p718_p11 }
  0x21   :  { %728 = shalt.err (!%p725_p1)
}
  0x22   :  { %25 = dma.hbm_to_vmem [thread:$0]  %s1001_s0, 128, %s23_s24, [#allocation3]  }
  0x23   :  { %s827_s20 = smov [#allocation7]   ;;  %s729_s25 = scalar_lea.hbm %s1003_s2, 2560 }
  0x24   :  { %s41_s21 = sshll.u32 %s827_s20, 4  ;;  %p730_p2 = scmp.ne.s32.totalorder %s1003_s2, %s729_s25  ;;  %s42_s21 = int_to_ptr.vmem [resolvable:$true] %s41_s21 }
  0x25   :  { %p733_p3 = scmp.lt.u32.totalorder %s729_s25, %s1003_s2 }
  0x27   :  { %p735_p4 = pnand %p733_p3, %p730_p2 }
  0x29   :  { %738 = shalt.err (!%p735_p4)
}
  0x2a   :  { %s739_s30 = scalar_lea.vmem %s42_s21, 2560  ;;  %p744_p6 = scmp.lt.s32.totalorder %s42_s21, %s42_s21 }
  0x2b   :  { %p740_p5 = scmp.ne.s32.totalorder %s42_s21, %s739_s30  ;;  %p745_p7 = scmp.lt.s32.totalorder %s739_s30, %s739_s30 }
  0x2d   :  { %p746_p8 = por %p745_p7, %p744_p6 }
  0x2f   :  { %p747_p9 = pnand %p746_p8, %p740_p5 }
  0x31   :  { %750 = shalt.err (!%p747_p9)
}
  0x32   :  { %s828_s0 = smov 64   ;;  %s829_s24 = smov 4  }
  0x33   :  { %47 = dma.hbm_to_vmem [thread:$0]  %s1003_s2, 2560, %s42_s21, [#allocation6], %s828_s0, %s828_s0, %s829_s24  }
  0x34   :  { %817 = dma.done.wait [#allocation3], 128  }
  0x35   :  { %818 = vsyncadd [#allocation3], 4294967168 }
  0x36   :  { %819 = dma.done.wait [#allocation6], 2688  }
  0x37   :  { %820 = vsyncadd [#allocation6], 4294964608  ;;  %v830_v0 = vmov 0.0   ;;  %vm831_vm0 = vmmov 0   ;;  %v661_v1 = vld [vmem:[#allocation7] sm:$0xff]   ;;  %v662_v2 = vld [vmem:[#allocation7 + $0x8] sm:$0xff]   ;;  %v74_v14 = vlaneseq }
  0x38   :  { %589 = vmatprep.subr.bf16.mxu0 %v830_v0  ;;  %597 = vmatprep.mubr.msk.bf16.mxu0 %vm831_vm0, %v830_v0  ;;  %vm63_vm1 = vcmask 244736   ;;  %v60_v3 = vld [vmem:[#allocation2] sm:$0xff]  ;;  %v665_v4 = vld [vmem:[#allocation7 + $0x20] sm:$0xff]   ;;  %vm102_vm2 = vcmask 523264   ;;  %v666_v7 = vld [vmem:[#allocation7 + $0x28] sm:$0xff]   ;;  %vm323_vm3 = vcmask 80896  }
  0x39   :  { %601 = vmatprep.subr.bf16.mxu1 %v830_v0  ;;  %609 = vmatprep.mubr.msk.bf16.mxu1 %vm831_vm0, %v830_v0  ;;  %v663_v5 = vld [vmem:[#allocation7 + $0x10] sm:$0xff]   ;;  %v64_v6 = vsel %vm63_vm1, %v60_v3, 0.0  ;;  %v664_v8 = vld [vmem:[#allocation7 + $0x18] sm:$0xff]   ;;  %v669_v12 = vld [vmem:[#allocation7 + $0x40] sm:$0xff]   ;;  %v928_v15 = vshrl.u32 %v74_v14, 7  ;;  %s833_s10 = smov 118  }
  0x3a   :  { %590 = vmatpush3.bf16.msra.mxu0 %v661_v1  ;;  %602 = vmatpush3.bf16.msra.mxu1 %v665_v4  ;;  %v65_v9 = vpack.c.bf16 %v64_v6, %v64_v6  ;;  %v667_v10 = vld [vmem:[#allocation7 + $0x30] sm:$0xff]   ;;  %v668_v11 = vld [vmem:[#allocation7 + $0x38] sm:$0xff]   ;;  %v670_v13 = vld [vmem:[#allocation7 + $0x48] sm:$0xff]   ;;  %s834_s11 = smov [#allocation9]  }
  0x3b   :  { %591 = vmatprep.subr.bf16.mxu0 %v830_v0  ;;  %603 = vmatprep.subr.bf16.mxu1 %v830_v0  ;;  %v76_v16 = vsub.s32 0, %v928_v15  ;;  %v934_v17 = vld [vmem:[%s1004_s3] sm:$0xff]  ;;  %v672_v27 = vld [vmem:[#allocation7 + $0x58] sm:$0xff]   ;;  %s832_s3 = smov 10   ;;  %v159_v29 = vsub.s32 1, %v928_v15  ;;  %v673_v38 = vld [vmem:[#allocation7 + $0x60] sm:$0xff]  }
  0x3c   :  { %v671_v26 = vld [vmem:[#allocation7 + $0x50] sm:$0xff]   ;;  %v61_v28 = vld [vmem:[#allocation5] sm:$0xff]  ;;  %v674_v39 = vld [vmem:[#allocation7 + $0x68] sm:$0xff]   ;;  %v241_v40 = vsub.s32 2, %v928_v15  ;;  %v337_v63 = vsub.s32 3, %v928_v15  ;;  %s512_s12 = sshll.u32 %s834_s11, 4  ;;  %s513_s12 = int_to_ptr.vmem [resolvable:$true] %s512_s12 }
  0x3d   :  { %v77_v18 = vrot.slane %v934_v17, %v76_v16  ;;  %314 = vrot.lane.b32.xlu0 %v61_v28, %s832_s3  ;;  %v160_v30 = vrot.slane %v934_v17, %v159_v29  ;;  %v675_v41 = vld [vmem:[#allocation7 + $0x70] sm:$0xff]   ;;  %v676_v50 = vld [vmem:[#allocation7 + $0x78] sm:$0xff]   ;;  %v677_v51 = vld [vmem:[#allocation7 + $0x80] sm:$0xff]   ;;  %s751_s13 = scalar_lea.vmem %s513_s12, 128  ;;  %p756_p11 = scmp.lt.s32.totalorder %s513_s12, %s513_s12 }
  0x3e   :  { %592 = vmatpush3.bf16.msra.mxu0 %v662_v2  ;;  %604 = vmatpush3.bf16.msra.mxu1 %v666_v7  ;;  %v242_v42 = vrot.slane %v934_v17, %v241_v40  ;;  %v678_v52 = vld [vmem:[#allocation7 + $0x88] sm:$0xff]   ;;  %v679_v61 = vld [vmem:[#allocation7 + $0x90] sm:$0xff]   ;;  %v680_v62 = vld [vmem:[#allocation7 + $0x98] sm:$0xff]   ;;  %v338_v1 = vrot.slane %v934_v17, %v337_v63  ;;  %p752_p10 = scmp.ne.s32.totalorder %s513_s12, %s751_s13  ;;  %p757_p12 = scmp.lt.s32.totalorder %s751_s13, %s751_s13 }
  0x3f   :  { %593 = vmatprep.subr.bf16.mxu0 %v830_v0  ;;  %605 = vmatprep.subr.bf16.mxu1 %v830_v0 }
  0x40   :  { %p758_p13 = por %p757_p12, %p756_p11 }
  0x42   :  { %594 = vmatpush3.bf16.msra.mxu0 %v663_v5  ;;  %606 = vmatpush3.bf16.msra.mxu1 %v667_v10  ;;  %p759_p0 = pnand %p758_p13, %p752_p10 }
  0x43   :  { %595 = vmatprep.subr.bf16.mxu0 %v830_v0  ;;  %607 = vmatprep.subr.bf16.mxu1 %v830_v0 }
  0x46   :  { %596 = vmatpush3.bf16.msra.mxu0 %v664_v8  ;;  %608 = vmatpush3.bf16.msra.mxu1 %v668_v11 }
  0x47   :  { %613 = vmatprep.subr.bf16.mxu0 %v830_v0  ;;  %625 = vmatprep.subr.bf16.mxu1 %v830_v0 }
  0x49   :  { %598 = vmatmul.mubr.msk.bf16.vlgmr.msra.gmra.mrb[0].mxu0 %vm102_vm2, %v65_v9 }
  0x4a   :  { %621 = vmatprep.mubr.msk.bf16.mxu0 %vm831_vm0, %v830_v0  ;;  %614 = vmatpush3.bf16.msra.mxu0 %v669_v12 }
  0x4b   :  { %615 = vmatprep.subr.bf16.mxu0 %v830_v0 }
  0x4e   :  { %616 = vmatpush3.bf16.msra.mxu0 %v670_v13 }
  0x4f   :  { %617 = vmatprep.subr.bf16.mxu0 %v830_v0 }
  0x52   :  { %618 = vmatpush3.bf16.msra.mxu0 %v671_v26 }
  0x53   :  { %619 = vmatprep.subr.bf16.mxu0 %v830_v0 }
  0x56   :  { %620 = vmatpush3.bf16.msra.mxu0 %v672_v27 }
  0x57   :  { %637 = vmatprep.subr.bf16.mxu0 %v830_v0 }
  0xaf   :  { %v315_v53 = vpop.permute.xlu0 %314 }
 0x11c   :  { %v140_v19 = vpop.f32.mrb[0].mxu0 }
 0x11d   :  { %v141_v20 = vadd.f32 %v140_v19, %v77_v18  ;;  %v599_v21 = vpop.f32.mrb[1].mxu0 }
 0x11e   :  { %v143_v22 = vpop.f32.mrb[2].mxu0 }
 0x11f   :  { %v146_v23 = vmax.f32 %v141_v20, 0.0  ;;  %v600_v24 = vpop.f32.mrb[3].mxu0 }
 0x121   :  { %v147_v25 = vpack.c.bf16 %v146_v23, %v146_v23 }
 0x123   :  { %610 = vmatmul.mubr.msk.bf16.vlgmr.msra.gmra.mrb[0].mxu1 %vm102_vm2, %v147_v25 }
 0x124   :  { %633 = vmatprep.mubr.msk.bf16.mxu1 %vm831_vm0, %v830_v0  ;;  %626 = vmatpush3.bf16.msra.mxu1 %v673_v38 }
 0x125   :  { %627 = vmatprep.subr.bf16.mxu1 %v830_v0 }
 0x128   :  { %628 = vmatpush3.bf16.msra.mxu1 %v674_v39 }
 0x129   :  { %629 = vmatprep.subr.bf16.mxu1 %v830_v0 }
 0x12c   :  { %630 = vmatpush3.bf16.msra.mxu1 %v675_v41 }
 0x12d   :  { %631 = vmatprep.subr.bf16.mxu1 %v830_v0 }
 0x130   :  { %632 = vmatpush3.bf16.msra.mxu1 %v676_v50 }
 0x1f6   :  { %v222_v31 = vpop.f32.mrb[0].mxu1 }
 0x1f7   :  { %v223_v32 = vadd.f32 %v222_v31, %v160_v30  ;;  %v611_v33 = vpop.f32.mrb[1].mxu1 }
 0x1f8   :  { %v225_v34 = vpop.f32.mrb[2].mxu1 }
 0x1f9   :  { %v228_v35 = vmax.f32 %v223_v32, 0.0  ;;  %v612_v36 = vpop.f32.mrb[3].mxu1 }
 0x1fb   :  { %v229_v37 = vpack.c.bf16 %v228_v35, %v228_v35 }
 0x1fd   :  { %622 = vmatmul.mubr.msk.bf16.vlgmr.msra.gmra.mrb[4].mxu0 %vm102_vm2, %v229_v37 }
 0x1fe   :  { %645 = vmatprep.mubr.msk.bf16.mxu0 %vm831_vm0, %v830_v0  ;;  %638 = vmatpush3.bf16.msra.mxu0 %v677_v51 }
 0x1ff   :  { %639 = vmatprep.subr.bf16.mxu0 %v830_v0 }
 0x202   :  { %640 = vmatpush3.bf16.msra.mxu0 %v678_v52 }
 0x203   :  { %641 = vmatprep.subr.bf16.mxu0 %v830_v0 }
 0x206   :  { %642 = vmatpush3.bf16.msra.mxu0 %v679_v61 }
 0x207   :  { %643 = vmatprep.subr.bf16.mxu0 %v830_v0 }
 0x20a   :  { %644 = vmatpush3.bf16.msra.mxu0 %v680_v62 }
 0x2d0   :  { %v304_v43 = vpop.f32.mrb[4].mxu0 }
 0x2d1   :  { %v305_v44 = vadd.f32 %v304_v43, %v242_v42  ;;  %v623_v45 = vpop.f32.mrb[5].mxu0 }
 0x2d2   :  { %v307_v46 = vpop.f32.mrb[6].mxu0 }
 0x2d3   :  { %v310_v47 = vmul.f32 0.5, %v305_v44  ;;  %492 = vrot.lane.b32.xlu1 %v305_v44, %s833_s10  ;;  %v624_v48 = vpop.f32.mrb[7].mxu0  ;;  %490 = vst.msk [vmem:[#allocation9] sm:$0xff] %vm323_vm3, %v305_v44 }
 0x2d5   :  { %v311_v49 = vmul.f32 1.442695, %v310_v47 }
 0x2d7   :  { %681 = vpow2.f32 %v311_v49 }
 0x2e1   :  { %v682_v54 = vpop.eup %681 }
 0x2e2   :  { %v317_v55 = vmul.f32 %v682_v54, %v315_v53 }
 0x2e4   :  { %319 = vrot.lane.b32.xlu0 %v317_v55, %s833_s10 }
 0x345   :  { %v493_v56 = vpop.permute.xlu1 %492 }
 0x346   :  { %495 = vst.msk [vmem:[#allocation11] sm:$0xff] %vm323_vm3, %v493_v56 }
 0x356   :  { %v320_v57 = vpop.permute.xlu0 %319 }
 0x357   :  { %v322_v58 = vadd.f32 %v320_v57, %v305_v44 }
 0x359   :  { %v324_v59 = vsel %vm323_vm3, %v322_v58, 0.0 }
 0x35a   :  { %v325_v60 = vpack.c.bf16 %v324_v59, %v324_v59 }
 0x35c   :  { %634 = vmatmul.mubr.msk.bf16.vlgmr.msra.gmra.mrb[4].mxu1 %vm102_vm2, %v325_v60 }
 0x42f   :  { %v400_v2 = vpop.f32.mrb[4].mxu1 }
 0x430   :  { %v401_v3 = vadd.f32 %v400_v2, %v338_v1  ;;  %v635_v4 = vpop.f32.mrb[5].mxu1 }
 0x431   :  { %v403_v5 = vpop.f32.mrb[6].mxu1 }
 0x432   :  { %v406_v6 = vmax.f32 %v401_v3, 0.0  ;;  %v636_v7 = vpop.f32.mrb[7].mxu1 }
 0x434   :  { %v407_v8 = vpack.c.bf16 %v406_v6, %v406_v6 }
 0x436   :  { %646 = vmatmul.mubr.msk.bf16.vlgmr.msra.gmra.mrb[8].mxu0 %vm102_vm2, %v407_v8 }
 0x437   :  { %762 = shalt.err (!%p759_p0)
}
 0x438   :  { %s763_s16 = scalar_lea.hbm %s1006_s5, 128 }
 0x439   :  { %p764_p1 = scmp.ne.s32.totalorder %s1006_s5, %s763_s16  ;;  %p767_p2 = scmp.lt.u32.totalorder %s763_s16, %s1006_s5 }
 0x43b   :  { %p769_p3 = pnand %p767_p2, %p764_p1 }
 0x43d   :  { %772 = shalt.err (!%p769_p3)
}
 0x43e   :  { %515 = dma.vmem_to_hbm [thread:$0]  %s513_s12, 128, %s1006_s5, [#allocation10]  }
 0x43f   :  { %s835_s22 = smov [#allocation11]  }
 0x440   :  { %s522_s23 = sshll.u32 %s835_s22, 4  ;;  %s523_s23 = int_to_ptr.vmem [resolvable:$true] %s522_s23 }
 0x441   :  { %s773_s25 = scalar_lea.vmem %s523_s23, 128  ;;  %p778_p5 = scmp.lt.s32.totalorder %s523_s23, %s523_s23 }
 0x442   :  { %p774_p4 = scmp.ne.s32.totalorder %s523_s23, %s773_s25  ;;  %p779_p6 = scmp.lt.s32.totalorder %s773_s25, %s773_s25 }
 0x444   :  { %p780_p7 = por %p779_p6, %p778_p5 }
 0x446   :  { %p781_p8 = pnand %p780_p7, %p774_p4 }
 0x448   :  { %784 = shalt.err (!%p781_p8)
}
 0x449   :  { %s785_s28 = scalar_lea.hbm %s1007_s6, 128 }
 0x44a   :  { %p786_p9 = scmp.ne.s32.totalorder %s1007_s6, %s785_s28  ;;  %p789_p10 = scmp.lt.u32.totalorder %s785_s28, %s1007_s6 }
 0x44c   :  { %p791_p11 = pnand %p789_p10, %p786_p9 }
 0x44e   :  { %794 = shalt.err (!%p791_p11)
}
 0x44f   :  { %525 = dma.vmem_to_hbm [thread:$0]  %s523_s23, 128, %s1007_s6, [#allocation10]   ;;  %v419_v0 = vsub.s32 4, %v928_v15 }
 0x450   :  { %s836_s8 = smov [#allocation8]  }
 0x451   :  { %v420_v9 = vrot.slane %v934_v17, %v419_v0  ;;  %s502_s2 = sshll.u32 %s836_s8, 4  ;;  %s503_s2 = int_to_ptr.vmem [resolvable:$true] %s502_s2 }
 0x452   :  { %s795_s9 = scalar_lea.vmem %s503_s2, 128  ;;  %p800_p13 = scmp.lt.s32.totalorder %s503_s2, %s503_s2 }
 0x453   :  { %p796_p12 = scmp.ne.s32.totalorder %s503_s2, %s795_s9  ;;  %p801_p0 = scmp.lt.s32.totalorder %s795_s9, %s795_s9 }
 0x455   :  { %p802_p1 = por %p801_p0, %p800_p13 }
 0x457   :  { %p803_p2 = pnand %p802_p1, %p796_p12 }
 0x509   :  { %v482_v10 = vpop.f32.mrb[8].mxu0 }
 0x50a   :  { %v483_v11 = vadd.f32 %v482_v10, %v420_v9  ;;  %v647_v12 = vpop.f32.mrb[9].mxu0 }
 0x50b   :  { %v485_v13 = vpop.f32.mrb[10].mxu0 }
 0x50c   :  { %683 = vtanh.f32 %v483_v11  ;;  %v648_v14 = vpop.f32.mrb[11].mxu0 }
 0x516   :  { %v684_v16 = vpop.eup %683 }
 0x517   :  { %489 = vst.msk [vmem:[#allocation8] sm:$0xff] %vm63_vm1, %v684_v16 }
 0x518   :  { %806 = shalt.err (!%p803_p2)
}
 0x519   :  { %s807_s10 = scalar_lea.hbm %s1005_s4, 128 }
 0x51a   :  { %p808_p3 = scmp.ne.s32.totalorder %s1005_s4, %s807_s10  ;;  %p811_p4 = scmp.lt.u32.totalorder %s807_s10, %s1005_s4 }
 0x51c   :  { %p813_p5 = pnand %p811_p4, %p808_p3 }
 0x51e   :  { %816 = shalt.err (!%p813_p5)
}
 0x51f   :  { %505 = dma.vmem_to_hbm [thread:$0]  %s503_s2, 128, %s1005_s4, [#allocation4]  }
 0x520   :  { %821 = dma.done.wait [#allocation4], 128  }
 0x521   :  { %822 = vsyncadd [#allocation4], 4294967168 }
 0x522   :  { %823 = dma.done.wait [#allocation10], 256  }
 0x523   :  { %824 = vsyncadd [#allocation10], 4294967040 }
 0x524   :  { %535 = vsyncpa [#allocation3], 1 }
 0x525   :  { %536 = vsyncpa [#allocation6], 1 }
 0x526   :  { %537 = vsyncpa [#allocation4], 1 }
 0x527   :  { %538 = vsyncpa [#allocation10], 1 }

</bundles_post_ra>
